<compile_context>
chip_gen: v6e
topology: v6e:2x2x1
jax: 0.10.0
libtpu: 0.0.40
codegen_flags: <defaults>
</compile_context>

<pallas_src>
import functools

import jax
import jax.numpy as jnp
from jax.experimental import pallas as pl
from jax.experimental.pallas import tpu as pltpu


VMEM_LIMIT = 48 * 1024 * 1024   # safe on v7x (64 MiB physical) and below


# ------------------------------ tiling helpers ------------------------------ #

def _tile(dim, target, align):
    """Tile size for a cdiv-padded axis: full dim if small, else the largest
    multiple of `align` that is <= target."""
    if dim <= target:
        return dim
    return max(align, (target // align) * align)


def _divisor_tile(dim, target, align):
    """Largest exact divisor of `dim` that is <= target and a multiple of
    `align`; falls back to the full dimension (always a legal block)."""
    if dim <= target:
        return dim
    t = (target // align) * align
    while t >= align:
        if dim % t == 0:
            return t
        t -= align
    return dim


# --------------------------- fused matmul kernel ---------------------------- #

def _matmul_kernel(*refs, nk, has_ln, has_res, activation, eps):
    it = iter(refs)
    x_ref = next(it)
    w_ref = next(it)
    b_ref = next(it)
    g_ref = be_ref = r_ref = None
    if has_ln:
        g_ref = next(it)
        be_ref = next(it)
    if has_res:
        r_ref = next(it)
    o_ref = next(it)
    xn_ref = next(it) if has_ln else None         # cached normalized rows
    acc_ref = next(it) if nk > 1 else None        # f32 accumulator (K-tiled)

    j = pl.program_id(1)
    kk = pl.program_id(2)

    def epilogue(y):
        y = y + b_ref[...].astype(jnp.float32)
        if activation == "gelu_tanh":
            c = jnp.float32(0.7978845608028654)   # sqrt(2/pi)
            y = 0.5 * y * (1.0 + jnp.tanh(c * (y + 0.044715 * y * y * y)))
        if has_res:
            y = y + r_ref[...].astype(jnp.float32)
        return y.astype(o_ref.dtype)

    if has_ln:
        # LayerNorm computed once per row block (j == 0), cached in VMEM
        # (bf16) and reused by every output-column tile.
        @pl.when(j == 0)
        def _():
            xf = x_ref[...].astype(jnp.float32)
            mean = jnp.mean(xf, axis=-1, keepdims=True)
            var = jnp.mean(jnp.square(xf - mean), axis=-1, keepdims=True)
            xf = (xf - mean) * jax.lax.rsqrt(var + eps)
            xf = xf * g_ref[...] + be_ref[...]
            xn_ref[...] = xf.astype(xn_ref.dtype)
        xin = xn_ref[...]
    else:
        xin = x_ref[...].astype(w_ref.dtype)      # stream activations as bf16

    if nk == 1:
        # single K step: write straight through the epilogue, no acc round trip
        y = jnp.dot(xin, w_ref[...], preferred_element_type=jnp.float32)
        o_ref[...] = epilogue(y)
    else:
        @pl.when(kk == 0)
        def _():
            acc_ref[...] = jnp.zeros_like(acc_ref)

        acc_ref[...] += jnp.dot(xin, w_ref[...],
                                preferred_element_type=jnp.float32)

        @pl.when(kk == nk - 1)
        def _():
            o_ref[...] = epilogue(acc_ref[...])


def fused_matmul(x, w, b, *, ln=None, residual=None, activation=None,
                 eps=1e-6, tm=256, tn=256, tk=512, out_dtype=None):
    """y = [optional residual +] [optional act](LN?(x) @ w + b)

    x: [M, K] (f32 or bf16), w: [K, N] (bf16), b: [N] (f32),
    ln: (gamma[K], beta[K]) f32, residual: [M, N].
    """
    M, K = x.shape
    K2, N = w.shape
    assert K == K2
    out_dtype = out_dtype or x.dtype

    has_ln = ln is not None
    has_res = residual is not None

    tm = _tile(M, tm, 16)
    tn = _tile(N, tn, 128)
    # LayerNorm needs the full row -> no K tiling in that case.  Otherwise take
    # an exact divisor of K (multiple of 128) or fall back to the full K.
    tk = K if has_ln else _divisor_tile(K, tk, 128)
    nk = K // tk
    grid = (pl.cdiv(M, tm), pl.cdiv(N, tn), nk)

    if has_ln:
        x_spec = pl.BlockSpec((tm, K), lambda i, j, k: (i, 0))
    else:
        x_spec = pl.BlockSpec((tm, tk), lambda i, j, k: (i, k))

    in_specs = [
        x_spec,
        pl.BlockSpec((tk, tn), lambda i, j, k: (k, j)),
        pl.BlockSpec((1, tn), lambda i, j, k: (0, j)),
    ]
    inputs = [x, w, b.reshape(1, N).astype(jnp.float32)]
    if has_ln:
        g, be = ln
        in_specs += [pl.BlockSpec((1, K), lambda i, j, k: (0, 0)),
                     pl.BlockSpec((1, K), lambda i, j, k: (0, 0))]
        inputs += [g.reshape(1, K).astype(jnp.float32),
                   be.reshape(1, K).astype(jnp.float32)]
    if has_res:
        in_specs.append(pl.BlockSpec((tm, tn), lambda i, j, k: (i, j)))
        inputs.append(residual)

    scratch = []
    if has_ln:
        scratch.append(pltpu.VMEM((tm, K), w.dtype))          # LN row cache
    if nk > 1:
        scratch.append(pltpu.VMEM((tm, tn), jnp.float32))     # accumulator

    bytes_accessed = sum(int(a.size) * a.dtype.itemsize for a in inputs)
    bytes_accessed += M * N * jnp.dtype(out_dtype).itemsize
    cost = pl.CostEstimate(
        flops=2 * M * N * K,
        transcendentals=(M * N if activation == "gelu_tanh" else 0),
        bytes_accessed=bytes_accessed,
    )

    kernel = functools.partial(_matmul_kernel, nk=nk, has_ln=has_ln,
                               has_res=has_res, activation=activation, eps=eps)

    # The LN cache is valid because, for a fixed row block i, the column tiles
    # j are visited in order starting at 0 -> keep j "arbitrary" when LN-fused.
    sem = ("parallel", "arbitrary" if has_ln else "parallel", "arbitrary")

    return pl.pallas_call(
        kernel,
        grid=grid,
        in_specs=in_specs,
        out_specs=pl.BlockSpec((tm, tn), lambda i, j, k: (i, j)),
        out_shape=jax.ShapeDtypeStruct((M, N), out_dtype),
        scratch_shapes=scratch,
        compiler_params=pltpu.CompilerParams(
            dimension_semantics=sem,
            vmem_limit_bytes=VMEM_LIMIT),
        cost_estimate=cost,
    )(*inputs)


# ----------------------------- patch embedding ------------------------------ #

def _patch_embed_kernel(x_ref, w_ref, b_ref, pos_ref, o_ref):
    xin = x_ref[0].astype(w_ref.dtype)                       # [ts, K] -> bf16
    y = jnp.dot(xin, w_ref[...], preferred_element_type=jnp.float32)
    y = y + b_ref[...].astype(jnp.float32) + pos_ref[...].astype(jnp.float32)
    o_ref[0] = y.astype(o_ref.dtype)


def patch_embed(x, w, b, pos, *, ts=256, tn=256, out_dtype=jnp.float32):
    """x: [B, S, K] patches, w: [K, E] bf16, b: [E], pos: [S, E].
    Returns [B, S, E] with the positional add fused into the epilogue."""
    B, S, K = x.shape
    K2, N = w.shape
    assert K == K2
    ts = _divisor_tile(S, ts, 8)        # exact divisor of S (pos indexing)
    tn = _tile(N, tn, 128)
    grid = (B, S // ts, pl.cdiv(N, tn))

    return pl.pallas_call(
        _patch_embed_kernel,
        grid=grid,
        in_specs=[pl.BlockSpec((1, ts, K), lambda bb, i, j: (bb, i, 0)),
                  pl.BlockSpec((K, tn), lambda bb, i, j: (0, j)),
                  pl.BlockSpec((1, tn), lambda bb, i, j: (0, j)),
                  pl.BlockSpec((ts, tn), lambda bb, i, j: (i, j))],
        out_specs=pl.BlockSpec((1, ts, tn), lambda bb, i, j: (bb, i, j)),
        out_shape=jax.ShapeDtypeStruct((B, S, N), out_dtype),
        compiler_params=pltpu.CompilerParams(
            dimension_semantics=("parallel", "parallel", "parallel"),
            vmem_limit_bytes=VMEM_LIMIT),
    )(x, w, b.reshape(1, N).astype(jnp.float32), pos.astype(jnp.float32))


# ------------------------------ attention ---------------------------------- #

def _attention_kernel(qkv_ref, o_ref, *, num_heads, head_dim, scale):
    h = pl.program_id(1)
    E = num_heads * head_dim
    lo = h * head_dim
    # slice only this head's q/k/v out of the packed [S, 3E] block
    q = qkv_ref[0, :, pl.ds(lo, head_dim)]                   # [S, Dh] bf16
    k = qkv_ref[0, :, pl.ds(E + lo, head_dim)]               # [S, Dh]
    v = qkv_ref[0, :, pl.ds(2 * E + lo, head_dim)]           # [S, Dh]

    qs = q * jnp.array(scale, dtype=q.dtype)                 # scale q, not S*S
    s = jax.lax.dot_general(qs, k, (((1,), (1,)), ((), ())),
                            preferred_element_type=jnp.float32)   # [S, S]
    s = s - jnp.max(s, axis=-1, keepdims=True)
    p = jnp.exp(s)
    p = p * pl.reciprocal(jnp.sum(p, axis=-1, keepdims=True), approx=True)
    o = jnp.dot(p.astype(v.dtype), v, preferred_element_type=jnp.float32)
    o_ref[0, 0] = o.astype(o_ref.dtype)                      # [S, Dh] store


def attention(qkv, num_heads, head_dim):
    """qkv: [B, S, 3E] (packed q|k|v, heads contiguous as in the PyTorch view)
    -> [B, H, S, Dh] per-head attention output (merge heads in the caller)."""
    B, S, E3 = qkv.shape
    return pl.pallas_call(
        functools.partial(_attention_kernel, num_heads=num_heads,
                          head_dim=head_dim, scale=head_dim ** -0.5),
        grid=(B, num_heads),
        in_specs=[pl.BlockSpec((1, S, E3), lambda b, h: (b, 0, 0))],
        out_specs=pl.BlockSpec((1, 1, S, head_dim), lambda b, h: (b, h, 0, 0)),
        out_shape=jax.ShapeDtypeStruct((B, num_heads, S, head_dim), qkv.dtype),
        compiler_params=pltpu.CompilerParams(
            dimension_semantics=("parallel", "parallel"),
            vmem_limit_bytes=VMEM_LIMIT),
    )(qkv)


# ------------------------------ layernorm ----------------------------------- #

def _layernorm_kernel(x_ref, g_ref, b_ref, o_ref, *, eps):
    x = x_ref[...].astype(jnp.float32)
    mean = jnp.mean(x, axis=-1, keepdims=True)
    var = jnp.mean(jnp.square(x - mean), axis=-1, keepdims=True)
    y = (x - mean) * jax.lax.rsqrt(var + eps)
    o_ref[...] = (y * g_ref[...] + b_ref[...]).astype(o_ref.dtype)


def layernorm(x, gamma, beta, eps, tm=512):
    M, E = x.shape
    tm = _tile(M, tm, 16)
    return pl.pallas_call(
        functools.partial(_layernorm_kernel, eps=eps),
        grid=(pl.cdiv(M, tm),),
        in_specs=[pl.BlockSpec((tm, E), lambda i: (i, 0)),
                  pl.BlockSpec((1, E), lambda i: (0, 0)),
                  pl.BlockSpec((1, E), lambda i: (0, 0))],
        out_specs=pl.BlockSpec((tm, E), lambda i: (i, 0)),
        out_shape=jax.ShapeDtypeStruct((M, E), x.dtype),
        compiler_params=pltpu.CompilerParams(
            dimension_semantics=("parallel",),
            vmem_limit_bytes=VMEM_LIMIT),
    )(x, gamma.reshape(1, E).astype(jnp.float32),
      beta.reshape(1, E).astype(jnp.float32))


# ------------------------------ model wrapper ------------------------------ #

def encoder_layer(h, lp, num_heads, eps):
    B, S, E = h.shape
    Dh = E // num_heads
    x2d = h.reshape(B * S, E)                                  # f32 residual

    # fused LayerNorm1 + QKV projection (single bf16 matmul against [E, 3E])
    qkv = fused_matmul(x2d, lp["qkv_w"], lp["qkv_b"],
                       ln=(lp["ln1_g"], lp["ln1_b"]), eps=eps,
                       out_dtype=jnp.bfloat16)                 # [B*S, 3E] bf16

    # (batch, head)-gridded attention on the packed qkv -> [B, H, S, Dh]
    ao = attention(qkv.reshape(B, S, 3 * E), num_heads, Dh)
    ao = ao.transpose(0, 2, 1, 3).reshape(B * S, E)            # merge heads

    # out-proj with residual add fused into the epilogue (f32 residual stream)
    x = fused_matmul(ao, lp["o_w"], lp["o_b"], residual=x2d,
                     out_dtype=jnp.float32)

    # fused LayerNorm2 + FC1 + tanh-GELU
    m = fused_matmul(x, lp["fc1_w"], lp["fc1_b"],
                     ln=(lp["ln2_g"], lp["ln2_b"]), eps=eps,
                     activation="gelu_tanh", out_dtype=jnp.bfloat16)

    # FC2 with residual add fused into the epilogue
    x = fused_matmul(m, lp["fc2_w"], lp["fc2_b"], residual=x,
                     out_dtype=jnp.float32)
    return x.reshape(B, S, E)


def siglip_vision_transformer(params, pixel_values, cfg):
    B, C, H, W = pixel_values.shape
    P, E = cfg["patch_size"], cfg["hidden_size"]
    Hn, Wn = H // P, W // P
    S = Hn * Wn

    # strided patch-conv == matmul over extracted patches (glue reshape)
    x = pixel_values.reshape(B, C, Hn, P, Wn, P)
    x = x.transpose(0, 2, 4, 1, 3, 5).reshape(B, S, C * P * P)
    # positional-embedding add is fused into the patch-embed kernel epilogue
    h = patch_embed(x, params["patch_w"], params["patch_b"],
                    params["pos_embed"], out_dtype=jnp.float32)   # [B, S, E]

    for lp in params["layers"]:
        h = encoder_layer(h, lp, cfg["num_attention_heads"],
                          cfg["layer_norm_eps"])

    out = layernorm(h.reshape(B * S, E), params["post_ln_g"],
                    params["post_ln_b"], cfg["layer_norm_eps"])
    return out.reshape(B, S, E)


# ----------------------------- parameter init ------------------------------ #

def init_params(key, cfg):
    E, I = cfg["hidden_size"], cfg["intermediate_size"]
    C, P = cfg["num_channels"], cfg["patch_size"]
    S = (cfg["img_size"] // P) ** 2
    L = cfg["num_hidden_layers"]

    keys = iter(jax.random.split(key, 3 + 12 * L))

    def w(shape, dtype=jnp.bfloat16):
        return (jax.random.normal(next(keys), shape, jnp.float32) * 0.02
                ).astype(dtype)

    params = {
        "patch_w": w((C * P * P, E)),                       # bf16 weight
        "patch_b": w((E,), jnp.float32),
        "pos_embed": w((S, E), jnp.float32),
        "post_ln_g": jnp.ones((E,), jnp.float32),
        "post_ln_b": jnp.zeros((E,), jnp.float32),
        "layers": [],
    }
    for _ in range(L):
        # q / k / v projection weights concatenated along the output dim
        q_w, k_w, v_w = w((E, E)), w((E, E)), w((E, E))
        q_b = w((E,), jnp.float32)
        k_b = w((E,), jnp.float32)
        v_b = w((E,), jnp.float32)
        lp = {
            "ln1_g": jnp.ones((E,), jnp.float32),
            "ln1_b": jnp.zeros((E,), jnp.float32),
            "qkv_w": jnp.concatenate([q_w, k_w, v_w], axis=1),   # [E, 3E] bf16
            "qkv_b": jnp.concatenate([q_b, k_b, v_b], axis=0),   # [3E] f32
            "o_w": w((E, E)), "o_b": w((E,), jnp.float32),
            "ln2_g": jnp.ones((E,), jnp.float32),
            "ln2_b": jnp.zeros((E,), jnp.float32),
            "fc1_w": w((E, I)), "fc1_b": w((I,), jnp.float32),
            "fc2_w": w((I, E)), "fc2_b": w((E,), jnp.float32),
        }
        params["layers"].append(lp)
    return params


# ---------------------------------- main ----------------------------------- #

if __name__ == "__main__":
    cfg = dict(
        hidden_size=32,
        intermediate_size=64,
        num_hidden_layers=2,
        num_attention_heads=4,
        num_channels=3,
        img_size=16,
        patch_size=8,
        layer_norm_eps=1e-6,
    )
    key = jax.random.PRNGKey(0)
    pkey, xkey = jax.random.split(key)
    params = init_params(pkey, cfg)

    # pixel_values in NCHW, like PyTorch
    pixel_values = jax.random.normal(
        xkey, (2, cfg["num_channels"], cfg["img_size"], cfg["img_size"]),
        jnp.float32)

    out = siglip_vision_transformer(params, pixel_values, cfg)
    out = jax.block_until_ready(out)
    S = (cfg["img_size"] // cfg["patch_size"]) ** 2
    assert out.shape == (2, S, cfg["hidden_size"])
    assert bool(jnp.isfinite(out).all())
    # TODO(synk): attention_dropout is 0.0 / inference-only, so dropout is a no-op here.
    print("KERNEL_OK")
</pallas_src>

<mosaic_0001>
module attributes {stable_mosaic.version = 11 : i64} {
  func.func @_patch_embed_kernel(%arg0: i32, %arg1: i32, %arg2: i32, %arg3: memref<1x4x192xf32, #tpu.memory_space<vmem>>, %arg4: memref<192x32xbf16, #tpu.memory_space<vmem>>, %arg5: memref<1x32xf32, #tpu.memory_space<vmem>>, %arg6: memref<4x32xf32, #tpu.memory_space<vmem>>, %arg7: memref<1x4x32xf32, #tpu.memory_space<vmem>>) attributes {dimension_semantics = [#tpu.dimension_semantics<parallel>, #tpu.dimension_semantics<parallel>, #tpu.dimension_semantics<parallel>], iteration_bounds = array<i64: 2, 1, 1>, scalar_prefetch = 0 : i64, scratch_operands = 0 : i64, tpu.core_type = #tpu.core_type<tc>, window_params = [{transform_indices = @transform_0, window_bounds = array<i64: 1, 4, 192>}, {transform_indices = @transform_1, window_bounds = array<i64: 192, 32>}, {transform_indices = @transform_2, window_bounds = array<i64: 1, 32>}, {transform_indices = @transform_3, window_bounds = array<i64: 4, 32>}, {transform_indices = @transform_4, window_bounds = array<i64: 1, 4, 32>}]} {
    %c0 = arith.constant 0 : index
    %c0_0 = arith.constant 0 : index
    %c0_1 = arith.constant 0 : index
    %0 = vector.load %arg3[%c0, %c0_0, %c0_1] : memref<1x4x192xf32, #tpu.memory_space<vmem>>, vector<1x4x192xf32>
    %1 = vector.shape_cast %0 : vector<1x4x192xf32> to vector<4x192xf32>
    %2 = arith.truncf %1 : vector<4x192xf32> to vector<4x192xbf16>
    %c0_2 = arith.constant 0 : index
    %c0_3 = arith.constant 0 : index
    %3 = vector.load %arg4[%c0_2, %c0_3] : memref<192x32xbf16, #tpu.memory_space<vmem>>, vector<192x32xbf16>
    %cst = arith.constant dense<0.000000e+00> : vector<4x32xf32>
    %4 = tpu.matmul %2, %3, %cst {dimension_numbers = #tpu.dot_dimension_numbers<[1], [0], [0], [1], [0, 0, 1, 1], [], []>} : vector<4x192xbf16>, vector<192x32xbf16>, vector<4x32xf32> -> vector<4x32xf32>
    %c0_4 = arith.constant 0 : index
    %c0_5 = arith.constant 0 : index
    %5 = vector.load %arg5[%c0_4, %c0_5] : memref<1x32xf32, #tpu.memory_space<vmem>>, vector<1x32xf32>
    %6 = vector.broadcast %5 : vector<1x32xf32> to vector<4x32xf32>
    %7 = arith.addf %4, %6 : vector<4x32xf32>
    %c0_6 = arith.constant 0 : index
    %c0_7 = arith.constant 0 : index
    %8 = vector.load %arg6[%c0_6, %c0_7] : memref<4x32xf32, #tpu.memory_space<vmem>>, vector<4x32xf32>
    %9 = arith.addf %7, %8 : vector<4x32xf32>
    %c0_8 = arith.constant 0 : index
    %c0_9 = arith.constant 0 : index
    %c0_10 = arith.constant 0 : index
    %10 = vector.load %arg7[%c0_8, %c0_9, %c0_10] : memref<1x4x32xf32, #tpu.memory_space<vmem>>, vector<1x4x32xf32>
    %11 = vector.shape_cast %10 : vector<1x4x32xf32> to vector<4x32xf32>
    %12 = vector.shape_cast %9 : vector<4x32xf32> to vector<1x4x32xf32>
    tpu.vector_store %arg7[%c0_8, %c0_9, %c0_10], %12 {strides = array<i32>} : memref<1x4x32xf32, #tpu.memory_space<vmem>>, vector<1x4x32xf32>,
    return
  }
  func.func @transform_0(%arg0: i32, %arg1: i32, %arg2: i32) -> (i32, i32, i32) {
    %c0_i32 = arith.constant 0 : i32
    %c0_i32_0 = arith.constant 0 : i32
    return %arg0, %arg1, %c0_i32 : i32, i32, i32
  }
  func.func @transform_1(%arg0: i32, %arg1: i32, %arg2: i32) -> (i32, i32) {
    %c0_i32 = arith.constant 0 : i32
    %c0_i32_0 = arith.constant 0 : i32
    return %c0_i32, %arg2 : i32, i32
  }
  func.func @transform_2(%arg0: i32, %arg1: i32, %arg2: i32) -> (i32, i32) {
    %c0_i32 = arith.constant 0 : i32
    %c0_i32_0 = arith.constant 0 : i32
    return %c0_i32, %arg2 : i32, i32
  }
  func.func @transform_3(%arg0: i32, %arg1: i32, %arg2: i32) -> (i32, i32) {
    %c0_i32 = arith.constant 0 : i32
    return %arg1, %arg2 : i32, i32
  }
  func.func @transform_4(%arg0: i32, %arg1: i32, %arg2: i32) -> (i32, i32, i32) {
    %c0_i32 = arith.constant 0 : i32
    return %arg0, %arg1, %arg2 : i32, i32, i32
  }
}

</mosaic_0001>

<bundles_post_ra>
// kernel: tpu_custom_call.1
= control target key start
LH: loop header
LB: loop body
LE: loop exit
PB: predicated region body
PF: predicated region fallthrough
CT: control target
= control target key end

     0   :  { %9 = vsyncpa [#allocation3], 0  ;;  %s949_s0 = inlined_call_operand.vmem [shape: f32[2,4,192], index: 0, kind: input, shape index: {}]   ;;  %s950_s1 = inlined_call_operand.vmem [shape: bf16[192,32], index: 1, kind: input, shape index: {}]   ;;  %s951_s2 = inlined_call_operand.vmem [shape: f32[1,32], index: 2, kind: input, shape index: {}]   ;;  %s952_s3 = inlined_call_operand.vmem [shape: f32[4,32], index: 3, kind: input, shape index: {}]   ;;  %s953_s4 = inlined_call_operand.hbm [shape: f32[2,4,32], index: 4, kind: output, shape index: {}]  }
   0x1   :  { %11 = vsyncpa [#allocation3 + $0x1], 0  ;;  %s796_s15 = smov 0   ;;  %s798_s16 = smov 0  }
   0x2   :  { %s800_s17 = smov 0   ;;  %s802_s18 = smov 0  }
   0x3   :  { %s804_s19 = smov 0   ;;  %s806_s20 = smov 0  }
   0x4 LB: > { %s592_s21 = sadd.s32 4294967295, %s767_s20   ;;  %s593_s22 = sadd.s32 4294967294, %s767_s20   ;;  %s767_s20 = sphi %s806_s20, %s17_s20   ;;  %s763_s19 = sphi %s804_s19, %s960_s19   ;;  %s759_s18 = sphi %s802_s18, %s959_s18   ;;  %s755_s17 = sphi %s800_s17, %s958_s17   ;;  %s751_s16 = sphi %s798_s16, %s957_s16   ;;  %s747_s15 = sphi %s796_s15, %s956_s15  }
   0x5   : > { %s36_s23 = sadd.s32 1, %s763_s19  ;;  %s155_s24 = sadd.s32 1, %s755_s17 }
   0x6   : > { %p38_p0 = scmp.ge.s32.totalorder %s36_s23, 2  ;;  %p165_p1 = scmp.ne.s32.totalorder %s755_s17, %s751_s16 }
   0x7   : > { %p166_p2 = scmp.eq.s32.totalorder %s592_s21, 1  ;;  %p171_p3 = scmp.ne.s32.totalorder %s751_s16, %s747_s15 }
   0x8   : > { %s962_s23 = smov (%p38_p0, %s36_s23), 0  ;;  %p172_p5 = scmp.eq.s32.totalorder %s593_s22, 1 }
   0x9   : > { %p836_p4 = por %p166_p2, %p165_p1  ;;  %s148_s26 = ssub.s32 %s763_s19, %s962_s23 }
   0xa   : > { %p599_p6 = scmp.ge.s32.totalorder %s767_s20, 1  ;;  %p153_p7 = scmp.eq.s32.totalorder %s148_s26, 0 }
   0xb   : > { %p843_p8 = por %p172_p5, %p171_p3  ;;  %p225_p9 = scmp.lt.s32.totalorder %s767_s20, 3 }
   0xc   : > { %s849_s28 = scalar_select %p153_p7, %s755_s17, %s155_s24  }
   0xd   : > { %p226_p10 = pnand %p599_p6, %p225_p9 }
   0xe   : > { %p269_p11 = scmp.lt.s32.totalorder (!%p226_p10), %s759_s18, 1  ;;  %s266_s22 = sand.u32 (!%p226_p10), 1, %s751_s16  }
   0xf   : > { %229 = sbr.rel (%p226_p10) target bundleno = 280 (0x118), region = 36  ;;  %s600_s24 = sshll.u32 (!%p226_p10), %s266_s22, 2 }
  0x10   : > { %s618_s6 = sshll.u32 (!%p226_p10), %s759_s18, 6 }
  0x11   : > { %s903_s11 = scalar_lea.hbm (!%p226_p10), %s953_s4, %s618_s6 }
  0x14   : > { %v678_v0 = vld [vmem:[%s950_s1 + $0x38] sm:$0xff]   ;;  %v769_v1 = vmov 0   ;;  %v679_v2 = vld [vmem:[%s950_s1 + $0x30] sm:$0xff]   ;;  %s270_s7 = scalar_select %p269_p11, %s759_s18, 1  ;;  %v680_v3 = vld [vmem:[%s950_s1 + $0x28] sm:$0xff]   ;;  %vm402_vm0 = vcmask 523264  }
  0x15   : > { %406 = vmatprep.subr.bf16.mxu0 %v769_v1  ;;  %v681_v4 = vld [vmem:[%s950_s1 + $0x20] sm:$0xff]   ;;  %v682_v7 = vld [vmem:[%s950_s1 + $0x18] sm:$0xff]   ;;  %v683_v9 = vld [vmem:[%s950_s1 + $0x10] sm:$0xff]   ;;  %vm448_vm1 = vcmask 257024   ;;  %s451_s18 = scalar_lea.sflag [#allocation3], %s266_s22 }
  0x16   : > { %407 = vmatpush1.bf16.msra.mxu0 %v678_v0  ;;  %s621_s10 = sshll.u32 %s270_s7, 3  ;;  %v684_v10 = vld [vmem:[%s950_s1 + $0x8] sm:$0xff]   ;;  %v685_v11 = vld [vmem:[%s950_s1] sm:$0xff]   ;;  %v686_v12 = vld [vmem:[%s950_s1 + $0x58] sm:$0xff]   ;;  %s268_s7 = scalar_lea.vmem [#allocation2], %s600_s24 }
  0x17   : > { %408 = vmatprep.subr.bf16.mxu0 %v769_v1  ;;  %s277_s13 = scalar_lea.vmem %s949_s0, %s621_s10  ;;  %v687_v13 = vld [vmem:[%s950_s1 + $0x50] sm:$0xff]   ;;  %v688_v14 = vld [vmem:[%s950_s1 + $0x48] sm:$0xff]   ;;  %v689_v15 = vld [vmem:[%s950_s1 + $0x40] sm:$0xff]   ;;  %s466_s8 = sshll.u32 %s268_s7, 4  ;;  %s905_s8 = int_to_ptr.vmem [resolvable:$true] %s466_s8 }
  0x18   : > { %v293_v5 = vld [vmem:[%s277_s13] sm:$0xff]  ;;  %s691_s12 = scalar_lea.vmem %s905_s8, 64  ;;  %s770_s13 = smov [#allocation2]  }
  0x19   : > { %v295_v6 = vcombine.high %v293_v5, %v293_v5  ;;  %v297_v16 = vpack.c.bf16 %v293_v5, %v293_v5  ;;  %v603_v17 = vld [vmem:[%s951_s2] ss:$0 sm:$0xff]  ;;  %p692_p12 = scmp.ne.s32.totalorder %s905_s8, %s691_s12  ;;  %s695_s14 = sshll.u32 %s770_s13, 4  ;;  %s696_s14 = int_to_ptr.vmem [resolvable:$false] %s695_s14 }
  0x1a   : > { %409 = vmatpush1.bf16.msra.mxu0 %v679_v2  ;;  %v446_v19 = vld [vmem:[%s952_s3] sm:$0xf]  ;;  %s697_s21 = scalar_lea.vmem %s696_s14, 128  ;;  %p698_p1 = scmp.lt.s32.totalorder %s905_s8, %s696_s14 }
  0x1b   : > { %410 = vmatprep.subr.bf16.mxu0 %v769_v1  ;;  %v298_v8 = vpack.c.bf16 %v295_v6, %v295_v6  ;;  %p693_p13 = pnand %p692_p12, %p836_p4  ;;  %p699_p2 = scmp.lt.s32.totalorder %s697_s21, %s691_s12 }
  0x1d   : > { %616 = vmatprep.mubr.msk.bf16.mxu0 %vm402_vm0, %v298_v8  ;;  %p694_p0 = pneg %p693_p13  ;;  %p700_p3 = por %p699_p2, %p698_p1 }
  0x1e   : > { %411 = vmatpush1.bf16.msra.mxu0 %v680_v3 }
  0x1f   : > { %412 = vmatprep.subr.bf16.mxu0 %v769_v1  ;;  %p701_p5 = pnand %p700_p3, %p694_p0 }
  0x22   : > { %413 = vmatpush1.bf16.msra.mxu0 %v681_v4 }
  0x23   : > { %414 = vmatprep.subr.bf16.mxu0 %v769_v1 }
  0x26   : > { %415 = vmatpush1.bf16.msra.mxu0 %v682_v7 }
  0x27   : > { %416 = vmatprep.subr.bf16.mxu0 %v769_v1 }
  0x2a   : > { %417 = vmatpush1.bf16.msra.mxu0 %v683_v9 }
  0x2b   : > { %418 = vmatprep.subr.bf16.mxu0 %v769_v1 }
  0x2e   : > { %419 = vmatpush1.bf16.msra.mxu0 %v684_v10 }
  0x2f   : > { %420 = vmatprep.subr.bf16.mxu0 %v769_v1 }
  0x32   : > { %421 = vmatpush1.bf16.msra.mxu0 %v685_v11 }
  0x33   : > { %430 = vmatprep.subr.bf16.mxu0 %v769_v1 }
  0x36   : > { %431 = vmatpush2.bf16.msra.mxu0 %v686_v12 }
  0x37   : > { %432 = vmatprep.subr.bf16.mxu0 %v769_v1 }
  0x3a   : > { %433 = vmatpush2.bf16.msra.mxu0 %v687_v13 }
  0x3b   : > { %434 = vmatprep.subr.bf16.mxu0 %v769_v1 }
  0x3e   : > { %435 = vmatpush2.bf16.msra.mxu0 %v688_v14 }
  0x3f   : > { %436 = vmatprep.subr.bf16.mxu0 %v769_v1 }
  0x42   : > { %437 = vmatpush2.bf16.msra.mxu0 %v689_v15 }
  0x45   : > { %439 = vmatmul.mubr.bf16.vlgmr.msra.gmra.mxu0 %v297_v16 }
 0x105   : > { %v440_v18 = vpop.f32.mrf.mxu0 }
 0x106   : > { %v441_v20 = vadd.f32 %v603_v17, %v440_v18 }
 0x107   : > { %v442_v21 = vpop.f32.mrf.mxu0 }
 0x108   : > { %v447_v22 = vadd.f32 %v446_v19, %v441_v20 }
 0x109   : > { %v443_v23 = vpop.f32.mrf.mxu0 }
 0x10a   : > { %449 = vst.msk [vmem:[%s268_s7] sm:$0xf] %vm448_vm1, %v447_v22 }
 0x10b   : > { %v444_v24 = vpop.f32.mrf.mxu0 }
 0x10c   : > { %704 = shalt.err (!%p701_p5)
}
 0x10d   : > { %s705_s24 = scalar_lea.hbm %s903_s11, 64  ;;  %s709_s29 = scalar_lea.hbm %s953_s4, 128 }
 0x10e   : > { %p706_p6 = scmp.ne.s32.totalorder %s903_s11, %s705_s24  ;;  %p710_p10 = scmp.lt.s32.totalorder %s903_s11, %s953_s4 }
 0x10f   : > { %p711_p11 = scmp.lt.s32.totalorder %s709_s29, %s705_s24 }
 0x110   : > { %p707_p7 = pnand %p706_p6, %p836_p4 }
 0x111   : > { %p712_p12 = por %p711_p11, %p710_p10 }
 0x112   : > { %p708_p9 = pneg %p707_p7 }
 0x114   : > { %p713_p13 = pnand %p712_p12, %p708_p9 }
 0x116   : > { %716 = shalt.err (!%p713_p13)
}
 0x117   : > { %622 = dma.vmem_to_hbm [thread:$0]  (%p836_p4), %s905_s8, 64, %s903_s11, %s451_s18  }
 0x118 PF: > { %p628_p0 = scmp.ge.s32.totalorder %s767_s20, 2  ;;  %s478_s6 = sand.u32 1, %s747_s15  }
 0x119   : > { %s479_s7 = scalar_lea.sflag [#allocation3], %s478_s6 }
 0x11a   : > { %p625_p1 = pnand %p628_p0, %p843_p8 }
 0x11c   : > { %p626_p2 = pneg %p625_p1 }
 0x11e   : > { %742 = dma.done.wait (%p626_p2), %s479_s7, 64  }
 0x11f   : > { %744 = vsyncadd (%p626_p2), %s479_s7, 4294967232  ;;  %s17_s20 = sadd.s32 1, %s767_s20   ;;  %s956_s15 = smov %s751_s16 }
 0x120   : > { %p14_p3 = scmp.ge.s32.totalorder %s17_s20, 4   ;;  %s957_s16 = smov %s755_s17 }
 0x121   : > { %s958_s17 = smov %s849_s28  ;;  %s959_s18 = smov %s763_s19 }
 0x122   : > { %s960_s19 = smov %s962_s23  ;;  %16 = sbr.rel (!%p14_p3) target bundleno = 4 (0x4), region = 80 }
 0x127   :  { %484 = vsyncpa [#allocation3], 1 }
 0x128   :  { %486 = vsyncpa [#allocation3 + $0x1], 1 }

</bundles_post_ra>
